<compile_context>
chip_gen: v7x
topology: tpu7x:2x2x1
jax: 0.10.0
libtpu: 0.0.40
codegen_flags: <defaults>
</compile_context>

<pallas_src>
import functools

import jax
import jax.numpy as jnp
from jax.experimental import pallas as pl
from jax.experimental.pallas import tpu as pltpu


def _vmem_budget():
    """Per-generation (per-input block byte target, vmem_limit_bytes)."""
    cap = None
    try:
        if hasattr(pltpu, "get_tpu_info"):
            cap = getattr(pltpu.get_tpu_info(), "vmem_capacity_bytes", None)
    except Exception:  # older JAX / query unavailable -> safe defaults below
        cap = None
    if cap is None:
        return 2 * 1024 * 1024, 40 * 1024 * 1024    # safe on v5e / v6e / v7x
    if cap >= 96 * 1024 * 1024:                      # v5e / v6e: 128 MiB physical VMEM
        return 4 * 1024 * 1024, 64 * 1024 * 1024
    return 2 * 1024 * 1024, 48 * 1024 * 1024         # v7x: 64 MiB per TensorCore


def _pick_tile_rows(n, k, itemsize, sublane, target_block_bytes):
    """Largest row tile whose per-input block stays near target_block_bytes.

    Byte-bounded only (no fixed row cap).  Rounds to a multiple of 128 rows when
    possible, else to the dtype's native sublane multiple.
    """
    rows = max(1, target_block_bytes // max(1, k * itemsize))
    if rows >= n:
        return n                                # single block == full array dims
    mult = 128 if rows >= 128 else sublane
    rows = max(mult, (rows // mult) * mult)
    return n if rows >= n else rows


def _soft_xent_kernel(*refs, reduction, use_weight, n_rows, tile_rows, mask_tail):
    """Row-tiled soft cross entropy.

    refs (in order): logits (tile_rows, k), target (tile_rows, k),
                     [weight (1, k) if use_weight], out.
    out: (tile_rows, 1) per-row block for 'none';
         (8, 128) per-block partial-sum block (broadcast scalar) otherwise.
    """
    if use_weight:
        logits_ref, target_ref, weight_ref, out_ref = refs
    else:
        logits_ref, target_ref, out_ref = refs
        weight_ref = None

    logits = logits_ref[...].astype(jnp.float32)   # (t, k)
    target = target_ref[...].astype(jnp.float32)   # (t, k)

    # Numerically-stable log-sum-exp over the class (lane) axis.
    m = jnp.max(logits, axis=-1, keepdims=True)                               # (t, 1)
    lse = m + jnp.log(jnp.sum(jnp.exp(logits - m), axis=-1, keepdims=True))   # (t, 1)

    tw = target * weight_ref[...].astype(jnp.float32) if use_weight else target

    # loss_i = sum_y tw[i,y] * (lse_i - logits[i,y])
    #        = lse_i * rowsum(tw)_i - rowsum(tw * logits)_i
    # (no full-width (t,k) broadcast subtract / temporary)
    per_row = (lse * jnp.sum(tw, axis=-1, keepdims=True)
               - jnp.sum(tw * logits, axis=-1, keepdims=True))                # (t, 1)

    if reduction == "none":
        # Rows past the true n in a partial last block fall outside the (n,1)
        # output window and are discarded by the writeback; no masking needed.
        out_ref[...] = per_row
    else:
        if mask_tail:
            # Zero rows beyond the true n so garbage in padded input rows cannot
            # leak into the partial sum (select never propagates NaN).
            row = (pl.program_id(0) * tile_rows
                   + jax.lax.broadcasted_iota(jnp.int32, per_row.shape, 0))
            per_row = jnp.where(row < n_rows, per_row, 0.0)
        block_sum = jnp.sum(per_row, axis=(0, 1), keepdims=True)              # (1, 1)
        # One unmasked f32 vreg per grid step; wrapper reads [0,0] of each block.
        out_ref[...] = jnp.broadcast_to(block_sum, out_ref.shape)


def soft_cross_entropy_loss(logits, target, weight=None,
                            reduction="elementwise_mean", block_rows=None):
    """JAX wrapper matching SoftCrossEntropyLoss.forward.

    logits/target may be f32 or bf16 (kept as-is for HBM traffic; math is f32).
    """
    if reduction not in ("none", "elementwise_mean", "sum"):
        raise ValueError(f"Unrecognized reduction: {reduction}")

    n, k = logits.shape
    if target.shape != (n, k):
        raise ValueError(f"target shape {target.shape} != logits shape {(n, k)}")

    use_weight = weight is not None
    item_l = jnp.dtype(logits.dtype).itemsize
    item_t = jnp.dtype(target.dtype).itemsize
    sublane = max(8, 32 // min(item_l, item_t))   # f32 -> 8, bf16 -> 16, int8/fp8 -> 32

    block_bytes, vmem_limit = _vmem_budget()
    if block_rows is None:
        tile_rows = _pick_tile_rows(n, k, max(item_l, item_t), sublane, block_bytes)
    else:
        tile_rows = n if block_rows >= n else max(sublane,
                                                  (block_rows // sublane) * sublane)

    num_blocks = pl.cdiv(n, tile_rows)
    mask_tail = (n % tile_rows) != 0

    in_specs = [
        pl.BlockSpec((tile_rows, k), lambda i: (i, 0)),   # logits row tile
        pl.BlockSpec((tile_rows, k), lambda i: (i, 0)),   # target row tile
    ]
    operands = [logits, target]
    if use_weight:
        weight2d = jnp.asarray(weight, dtype=jnp.float32).reshape(1, k)
        in_specs.append(pl.BlockSpec((1, k), lambda i: (0, 0)))  # constant block
        operands.append(weight2d)

    if reduction == "none":
        out_shape = jax.ShapeDtypeStruct((n, 1), jnp.float32)
        out_specs = pl.BlockSpec((tile_rows, 1), lambda i: (i, 0))
    else:
        # One (8,128) partial-sum block per row block: every grid step owns a
        # distinct output block, so the row axis stays "parallel" (both v7x TCs)
        # and the final reduce is a short XLA tree-sum in the wrapper.
        out_shape = jax.ShapeDtypeStruct((num_blocks * 8, 128), jnp.float32)
        out_specs = pl.BlockSpec((8, 128), lambda i: (i, 0))

    kernel = functools.partial(
        _soft_xent_kernel, reduction=reduction, use_weight=use_weight,
        n_rows=n, tile_rows=tile_rows, mask_tail=mask_tail)

    bytes_in = n * k * (item_l + item_t) + (k * 4 if use_weight else 0)
    bytes_out = n * 4 if reduction == "none" else num_blocks * 8 * 128 * 4
    cost = pl.CostEstimate(flops=5 * n * k, transcendentals=n * k,
                           bytes_accessed=bytes_in + bytes_out)

    res = pl.pallas_call(
        kernel,
        out_shape=out_shape,
        grid_spec=pltpu.PrefetchScalarGridSpec(
            num_scalar_prefetch=0,
            grid=(num_blocks,),
            in_specs=in_specs,
            out_specs=out_specs),
        compiler_params=pltpu.CompilerParams(
            dimension_semantics=("parallel",),     # row blocks independent on all paths
            vmem_limit_bytes=vmem_limit),
        cost_estimate=cost,
    )(*operands)

    if reduction == "none":
        return res[:, 0]
    partials = res.reshape(num_blocks, 8 * 128)[:, 0]
    total = jnp.sum(partials)
    if reduction == "sum":
        return total
    return total / n


def _reference(logits, target, weight, reduction):
    """Pure-JAX reference mirroring the PyTorch per-class loop."""
    logits = logits.astype(jnp.float32)
    target = target.astype(jnp.float32)
    lse = jax.nn.logsumexp(logits, axis=-1, keepdims=True)
    per_class = (lse - logits) * weight[None, :]
    cum = jnp.sum(target * per_class, axis=-1)
    if reduction == "none":
        return cum
    if reduction == "elementwise_mean":
        return jnp.mean(cum)
    return jnp.sum(cum)


def _check(out, ref, label, rtol=1e-5, atol=1e-5):
    out = jax.block_until_ready(out)
    if not jnp.allclose(out, ref, rtol=rtol, atol=atol):
        print(f"MISMATCH [{label}]: {out} vs {ref}")
        return False
    return True


if __name__ == "__main__":
    key = jax.random.PRNGKey(0)
    ok = True

    # --- Case 1: small f32, single block (n=8, k=32), all reductions, with weight.
    n, k = 8, 32
    key_a, key_b = jax.random.split(key)
    logits = jax.random.normal(key_a, (n, k), dtype=jnp.float32)
    target = jax.nn.softmax(jax.random.normal(key_b, (n, k), dtype=jnp.float32), axis=-1)
    weight = jnp.linspace(0.5, 1.5, k, dtype=jnp.float32)

    for reduction in ("elementwise_mean", "sum", "none"):
        out = soft_cross_entropy_loss(logits, target, weight=weight,
                                      reduction=reduction)
        ref = _reference(logits, target, weight, reduction)
        ok &= _check(out, ref, f"f32/{reduction}")

    # weight=None (default module config) -> weight-elided kernel variant.
    out = soft_cross_entropy_loss(logits, target, weight=None,
                                  reduction="elementwise_mean")
    ref = _reference(logits, target, jnp.ones((k,), jnp.float32), "elementwise_mean")
    ok &= _check(out, ref, "f32/no-weight/mean")

    # --- Case 2: multi-block + tail mask + per-block partial sums
    #             (n=20 rows, forced 8-row tiles -> 3 blocks, last partial).
    n2, kc = 20, 32
    key_c, key_d = jax.random.split(key_a)
    logits2 = jax.random.normal(key_c, (n2, kc), dtype=jnp.float32)
    target2 = jax.nn.softmax(jax.random.normal(key_d, (n2, kc), dtype=jnp.float32), -1)
    weight2 = jnp.linspace(0.8, 1.2, kc, dtype=jnp.float32)
    for reduction in ("elementwise_mean", "sum", "none"):
        out = soft_cross_entropy_loss(logits2, target2, weight=weight2,
                                      reduction=reduction, block_rows=8)
        ref = _reference(logits2, target2, weight2, reduction)
        ok &= _check(out, ref, f"tiled/{reduction}")

    # --- Case 3: bf16 inputs (halved HBM traffic; f32 math in-kernel).
    n3 = 16
    logits3 = jax.random.normal(key_c, (n3, k), dtype=jnp.float32).astype(jnp.bfloat16)
    target3 = jax.nn.softmax(
        jax.random.normal(key_d, (n3, k), dtype=jnp.float32), -1).astype(jnp.bfloat16)
    out = soft_cross_entropy_loss(logits3, target3, weight=weight,
                                  reduction="elementwise_mean")
    ref = _reference(logits3, target3, weight, "elementwise_mean")
    ok &= _check(out, ref, "bf16/mean", rtol=1e-3, atol=1e-3)

    if ok:
        print("KERNEL_OK")
</pallas_src>

<mosaic_0001>
module attributes {stable_mosaic.version = 11 : i64} {
  func.func @_soft_xent_kernel(%arg0: i32, %arg1: memref<8x32xf32, #tpu.memory_space<vmem>>, %arg2: memref<8x32xf32, #tpu.memory_space<vmem>>, %arg3: memref<1x32xf32, #tpu.memory_space<vmem>>, %arg4: memref<8x128xf32, #tpu.memory_space<vmem>>) attributes {dimension_semantics = [#tpu.dimension_semantics<parallel>], iteration_bounds = array<i64: 1>, scalar_prefetch = 0 : i64, scratch_operands = 0 : i64, tpu.core_type = #tpu.core_type<tc>, window_params = [{transform_indices = @transform_0, window_bounds = array<i64: 8, 32>}, {transform_indices = @transform_1, window_bounds = array<i64: 8, 32>}, {pipeline_mode = #tpu.pipeline_mode<synchronous>, transform_indices = @transform_2, window_bounds = array<i64: 1, 32>}, {transform_indices = @transform_3, window_bounds = array<i64: 8, 128>}]} {
    %c0 = arith.constant 0 : index
    %c0_0 = arith.constant 0 : index
    %0 = vector.load %arg1[%c0, %c0_0] : memref<8x32xf32, #tpu.memory_space<vmem>>, vector<8x32xf32>
    %c0_1 = arith.constant 0 : index
    %c0_2 = arith.constant 0 : index
    %1 = vector.load %arg2[%c0_1, %c0_2] : memref<8x32xf32, #tpu.memory_space<vmem>>, vector<8x32xf32>
    %cst = arith.constant dense<0xFF800000> : vector<8xf32>
    %2 = vector.multi_reduction <maximumf>, %0, %cst [1] : vector<8x32xf32> to vector<8xf32>
    %3 = vector.shape_cast %2 : vector<8xf32> to vector<8x1xf32>
    %4 = vector.broadcast %3 : vector<8x1xf32> to vector<8x32xf32>
    %5 = arith.subf %0, %4 : vector<8x32xf32>
    %6 = math.exp %5 : vector<8x32xf32>
    %cst_3 = arith.constant dense<0.000000e+00> : vector<8xf32>
    %7 = vector.multi_reduction <add>, %6, %cst_3 [1] : vector<8x32xf32> to vector<8xf32>
    %8 = vector.shape_cast %7 : vector<8xf32> to vector<8x1xf32>
    %9 = math.log %8 : vector<8x1xf32>
    %10 = arith.addf %3, %9 : vector<8x1xf32>
    %c0_4 = arith.constant 0 : index
    %c0_5 = arith.constant 0 : index
    %11 = vector.load %arg3[%c0_4, %c0_5] : memref<1x32xf32, #tpu.memory_space<vmem>>, vector<1x32xf32>
    %12 = vector.broadcast %11 : vector<1x32xf32> to vector<8x32xf32>
    %13 = arith.mulf %1, %12 : vector<8x32xf32>
    %cst_6 = arith.constant dense<0.000000e+00> : vector<8xf32>
    %14 = vector.multi_reduction <add>, %13, %cst_6 [1] : vector<8x32xf32> to vector<8xf32>
    %15 = vector.shape_cast %14 : vector<8xf32> to vector<8x1xf32>
    %16 = arith.mulf %10, %15 : vector<8x1xf32>
    %17 = arith.mulf %13, %0 : vector<8x32xf32>
    %cst_7 = arith.constant dense<0.000000e+00> : vector<8xf32>
    %18 = vector.multi_reduction <add>, %17, %cst_7 [1] : vector<8x32xf32> to vector<8xf32>
    %19 = vector.shape_cast %18 : vector<8xf32> to vector<8x1xf32>
    %20 = arith.subf %16, %19 : vector<8x1xf32>
    %21 = vector.shape_cast %20 : vector<8x1xf32> to vector<1x8x1xf32>
    %cst_8 = arith.constant dense<0.000000e+00> : vector<1xf32>
    %22 = vector.multi_reduction <add>, %21, %cst_8 [1, 2] : vector<1x8x1xf32> to vector<1xf32>
    %23 = vector.shape_cast %22 : vector<1xf32> to vector<1x1x1xf32>
    %24 = vector.extract %23[0, 0, 0] : f32 from vector<1x1x1xf32>
    %25 = vector.broadcast %24 : f32 to vector<1x1xf32>
    %26 = vector.shape_cast %25 : vector<1x1xf32> to vector<1x1xf32>
    %27 = vector.broadcast %26 : vector<1x1xf32> to vector<8x128xf32>
    %c0_9 = arith.constant 0 : index
    %c0_10 = arith.constant 0 : index
    %28 = vector.load %arg4[%c0_9, %c0_10] : memref<8x128xf32, #tpu.memory_space<vmem>>, vector<8x128xf32>
    tpu.vector_store %arg4[%c0_9, %c0_10], %27 {strides = array<i32>} : memref<8x128xf32, #tpu.memory_space<vmem>>, vector<8x128xf32>,
    return
  }
  func.func @transform_0(%arg0: i32) -> (i32, i32) {
    %c0_i32 = arith.constant 0 : i32
    %c0_i32_0 = arith.constant 0 : i32
    return %arg0, %c0_i32 : i32, i32
  }
  func.func @transform_1(%arg0: i32) -> (i32, i32) {
    %c0_i32 = arith.constant 0 : i32
    %c0_i32_0 = arith.constant 0 : i32
    return %arg0, %c0_i32 : i32, i32
  }
  func.func @transform_2(%arg0: i32) -> (i32, i32) {
    %c0_i32 = arith.constant 0 : i32
    %c0_i32_0 = arith.constant 0 : i32
    %c0_i32_1 = arith.constant 0 : i32
    return %c0_i32, %c0_i32_0 : i32, i32
  }
  func.func @transform_3(%arg0: i32) -> (i32, i32) {
    %c0_i32 = arith.constant 0 : i32
    %c0_i32_0 = arith.constant 0 : i32
    return %arg0, %c0_i32 : i32, i32
  }
}

</mosaic_0001>

<bundles_post_ra>
// kernel: tpu_custom_call.1
= control target key start
LH: loop header
LB: loop body
LE: loop exit
PB: predicated region body
PF: predicated region fallthrough
CT: control target
= control target key end

     0   :  { %8 = vsyncpa [#allocation3], 0  ;;  %s248_s0 = inlined_call_operand.hbm [shape: f32[8,32], index: 0, kind: input, shape index: {}]   ;;  %s249_s1 = inlined_call_operand.hbm [shape: f32[8,32], index: 1, kind: input, shape index: {}]   ;;  %s250_s2 = inlined_call_operand.vmem [shape: f32[1,32], index: 2, kind: input, shape index: {}]   ;;  %s251_s3 = inlined_call_operand.hbm [shape: f32[8,128], index: 3, kind: output, shape index: {}]  }
   0x1   :  { %9 = vsyncpa [#allocation6], 0 }
   0x2   :  { %10 = vsyncpa [#allocation4], 0  ;;  %s182_s12 = smov [#allocation2]   ;;  %s183_s14 = smov [#allocation5]  }
   0x3   :  { %s17_s13 = sshll.u32 %s182_s12, 4  ;;  %s27_s15 = sshll.u32 %s183_s14, 4  ;;  %s18_s13 = int_to_ptr.vmem [resolvable:$true] %s17_s13  ;;  %s28_s15 = int_to_ptr.vmem [resolvable:$true] %s27_s15 }
   0x4   :  { %s110_s18 = scalar_lea.hbm %s248_s0, 128 }
   0x5   :  { %p111_p0 = scmp.ne.s32.totalorder %s248_s0, %s110_s18  ;;  %p114_p1 = scmp.lt.u32.totalorder %s110_s18, %s248_s0 }
   0x7   :  { %p116_p2 = pnand %p114_p1, %p111_p0 }
   0x9   :  { %119 = shalt.err (!%p116_p2)
}
   0xa   :  { %s120_s23 = scalar_lea.vmem %s18_s13, 128  ;;  %p125_p4 = scmp.lt.s32.totalorder %s18_s13, %s18_s13 }
   0xb   :  { %p121_p3 = scmp.ne.s32.totalorder %s18_s13, %s120_s23  ;;  %p126_p5 = scmp.lt.s32.totalorder %s120_s23, %s120_s23 }
   0xd   :  { %p127_p6 = por %p126_p5, %p125_p4 }
   0xf   :  { %p128_p7 = pnand %p127_p6, %p121_p3 }
  0x11   :  { %131 = shalt.err (!%p128_p7)
}
  0x12   :  { %20 = dma.hbm_to_vmem [thread:$0]  %s248_s0, 128, %s18_s13, [#allocation3]  }
  0x13   :  { %s132_s28 = scalar_lea.hbm %s249_s1, 128 }
  0x14   :  { %p133_p8 = scmp.ne.s32.totalorder %s249_s1, %s132_s28  ;;  %p136_p9 = scmp.lt.u32.totalorder %s132_s28, %s249_s1 }
  0x16   :  { %p138_p10 = pnand %p136_p9, %p133_p8 }
  0x18   :  { %141 = shalt.err (!%p138_p10)
}
  0x19   :  { %s142_s6 = scalar_lea.vmem %s28_s15, 128  ;;  %p147_p12 = scmp.lt.s32.totalorder %s28_s15, %s28_s15 }
  0x1a   :  { %p143_p11 = scmp.ne.s32.totalorder %s28_s15, %s142_s6  ;;  %p148_p13 = scmp.lt.s32.totalorder %s142_s6, %s142_s6 }
  0x1c   :  { %p149_p0 = por %p148_p13, %p147_p12 }
  0x1e   :  { %p150_p1 = pnand %p149_p0, %p143_p11 }
  0x20   :  { %153 = shalt.err (!%p150_p1)
}
  0x21   :  { %30 = dma.hbm_to_vmem [thread:$0]  %s249_s1, 128, %s28_s15, [#allocation6]  }
  0x22   :  { %176 = dma.done.wait [#allocation3], 128  }
  0x23   :  { %177 = vsyncadd [#allocation3], 4294967168 }
  0x24   :  { %178 = dma.done.wait [#allocation6], 128  }
  0x25   :  { %179 = vsyncadd [#allocation6], 4294967168  ;;  %vm41_vm0 = vcmask 261120   ;;  %v39_v0 = vld [vmem:[#allocation2] sm:$0xff]  ;;  %v40_v2 = vld [vmem:[#allocation5] sm:$0xff]  ;;  %vm71_vm1 = vcmask 7168  }
  0x26   :  { %v42_v1 = vsel %vm41_vm0, %v39_v0, -inf  ;;  %v100_v3 = vld [vmem:[%s250_s2] ss:$0 sm:$0xff]  ;;  %s184_s1 = smov [#allocation7]  }
  0x27   :  { %43 = vmax.xlane.f32.xlu0 %v42_v1  ;;  %v61_v4 = vmul.f32 %v100_v3, %v40_v2  ;;  %s90_s2 = sshll.u32 %s184_s1, 4  ;;  %s91_s2 = int_to_ptr.vmem [resolvable:$true] %s90_s2 }
  0x28   :  { %s154_s11 = scalar_lea.vmem %s91_s2, 128  ;;  %p159_p3 = scmp.lt.s32.totalorder %s91_s2, %s91_s2 }
  0x29   :  { %v62_v5 = vsel %vm41_vm0, %v61_v4, 0.0  ;;  %v66_v6 = vmul.f32 %v61_v4, %v39_v0  ;;  %p155_p2 = scmp.ne.s32.totalorder %s91_s2, %s154_s11  ;;  %p160_p4 = scmp.lt.s32.totalorder %s154_s11, %s154_s11 }
  0x2a   :  { %63 = vadd.xlane.f32.xlu1 %v62_v5 }
  0x2b   :  { %v67_v7 = vsel %vm41_vm0, %v66_v6, 0.0  ;;  %p161_p5 = por %p160_p4, %p159_p3 }
  0x2d   :  { %p162_p6 = pnand %p161_p5, %p155_p2 }
  0x2e   :  { %68 = vadd.xlane.f32.xlu1 %v67_v7 }
  0xb4   :  { %v44_v8 = vpop.xlane.xlu0 %43 }
  0xb5   :  { %v45_v9 = vsub.f32 %v39_v0, %v44_v8 }
  0xb7   :  { %v46_v10 = vmul.f32 1.442695, %v45_v9  ;;  %v64_v14 = vpop.xlane.xlu1 %63 }
  0xb9   :  { %106 = vpow2.f32 %v46_v10 }
  0xbb   :  { %v69_v18 = vpop.xlane.xlu1 %68 }
  0xc3   :  { %v107_v11 = vpop.eup %106 }
  0xc4   :  { %v48_v12 = vsel %vm41_vm0, %v107_v11, 0.0 }
  0xc5   :  { %49 = vadd.xlane.f32.xlu0 %v48_v12 }
 0x152   :  { %v50_v13 = vpop.xlane.xlu0 %49 }
 0x153   :  { %108 = vlog2.f32 %v50_v13 }
 0x15d   :  { %v109_v15 = vpop.eup %108 }
 0x15e   :  { %v52_v16 = vmul.f32 0.6931472, %v109_v15 }
 0x160   :  { %v53_v17 = vadd.f32 %v52_v16, %v44_v8 }
 0x162   :  { %v65_v19 = vmul.f32 %v64_v14, %v53_v17 }
 0x164   :  { %v70_v20 = vsub.f32 %v65_v19, %v69_v18 }
 0x166   :  { %v72_v21 = vsel %vm71_vm1, %v70_v20, 0.0 }
 0x167   :  { %73 = vadd.xlane.f32.xlu0 %v72_v21 }
 0x1f4   :  { %v74_v22 = vpop.xlane.xlu0 %73 }
 0x1f5   :  { %v75_v23 = vrot.slane %v74_v22, 4 }
 0x1f7   :  { %v76_v24 = vadd.f32 %v75_v23, %v74_v22 }
 0x1f9   :  { %v77_v25 = vrot.slane %v76_v24, 2 }
 0x1fb   :  { %v78_v26 = vadd.f32 %v77_v25, %v76_v24 }
 0x1fd   :  { %v79_v27 = vrot.slane %v78_v26, 1 }
 0x1ff   :  { %v80_v28 = vadd.f32 %v79_v27, %v78_v26 }
 0x201   :  { %101 = vpush %v80_v28 }
 0x232   :  { %s102_s10 = spop %101 }
 0x233   :  { %v82_v29 = vstv %s102_s10 }
 0x234   :  { %83 = vst [vmem:[#allocation7] sm:$0xff] %v82_v29 }
 0x235   :  { %165 = shalt.err (!%p162_p6)
}
 0x236   :  { %s166_s14 = scalar_lea.hbm %s251_s3, 128 }
 0x237   :  { %p167_p7 = scmp.ne.s32.totalorder %s251_s3, %s166_s14  ;;  %p170_p8 = scmp.lt.u32.totalorder %s166_s14, %s251_s3 }
 0x239   :  { %p172_p9 = pnand %p170_p8, %p167_p7 }
 0x23b   :  { %175 = shalt.err (!%p172_p9)
}
 0x23c   :  { %93 = dma.vmem_to_hbm [thread:$0]  %s91_s2, 128, %s251_s3, [#allocation4]  }
 0x23d   :  { %180 = dma.done.wait [#allocation4], 128  }
 0x23e   :  { %181 = vsyncadd [#allocation4], 4294967168 }
 0x23f   :  { %97 = vsyncpa [#allocation3], 1 }
 0x240   :  { %98 = vsyncpa [#allocation6], 1 }
 0x241   :  { %99 = vsyncpa [#allocation4], 1 }

</bundles_post_ra>
